<compile_context>
chip_gen: v7x
topology: tpu7x:2x2x1
jax: 0.10.0
libtpu: 0.0.40
codegen_flags: <defaults>
</compile_context>

<pallas_src>
import functools

import jax
import jax.numpy as jnp
from jax import lax
from jax.experimental import pallas as pl
from jax.experimental.pallas import tpu as pltpu

_EPS = 1e-12          # torch.nn.functional.normalize default eps
_EPS2 = _EPS * _EPS
_LANES = 128
_TM_MAX = 1024            # row-tile cap
_MIN_TILES = 8            # aim for >= 8 grid steps (>= 4 per core when split)
_MIN_TILE_BYTES = 1 << 20  # but never shrink a step below ~1 MiB of x+y data


def _round_up(x, m):
    return ((x + m - 1) // m) * m


def _row_pack(dtype):
    """Sublane row-packing multiple for a dtype (8 f32, 16 bf16, 32 int8)."""
    return 8 * max(1, 4 // jnp.dtype(dtype).itemsize)


@functools.lru_cache(maxsize=None)
def _tpu_info():
    try:
        return pltpu.get_tpu_info()
    except Exception:
        return None


@functools.lru_cache(maxsize=None)
def _vmem_capacity_bytes():
    info = _tpu_info()
    v = getattr(info, "vmem_capacity_bytes", None) if info is not None else None
    try:
        v = int(v) if v else None
    except Exception:
        v = None
    # Conservative default = v7x's 64 MiB (smallest of v5e/v6e/v7x).
    return v if (v and v > (8 << 20)) else (64 << 20)


def _vmem_limit_bytes():
    return min((_vmem_capacity_bytes() * 3) // 4, 100 << 20)


def _tile_budget_bytes():
    # Tiles (double-buffered inputs + f32 intermediates) sized to 2/3 of the
    # requested scoped-VMEM limit, leaving headroom for Mosaic scratch.
    return (_vmem_limit_bytes() * 2) // 3


@functools.lru_cache(maxsize=None)
def _num_tensorcores():
    info = _tpu_info()
    for attr in ("num_cores", "core_count", "tensorcore_count", "num_tensorcores"):
        v = getattr(info, attr, None) if info is not None else None
        try:
            if v and int(v) >= 1:
                return int(v)
        except Exception:
            pass
    try:
        v = getattr(jax.devices()[0], "num_cores", None)
        if v and int(v) >= 1:
            return int(v)
    except Exception:
        pass
    return 2   # unknown: assume megacore-capable; the split is harmless on 1-TC parts


def _repalign_kernel(x_ref, y_ref, o_ref, *, rows_total, tiles_per_core,
                     per_element):
    """Accumulate the tile's contribution to sum((normalize(x)-normalize(y))^2).

    x_ref, y_ref: (tr, L) or (tr, H, W) tiles in VMEM; one normalization row
                  per leading index (per-element math when per_element=True).
    o_ref:        (1, 1) f32 partial sum, resident across the inner
                  ("arbitrary") grid axis; one block per core-split index.
    """
    c = pl.program_id(0)    # core-split axis ("parallel")
    i = pl.program_id(1)    # row-tile axis ("arbitrary", accumulating)

    @pl.when(i == 0)
    def _():
        o_ref[...] = jnp.zeros_like(o_ref)

    x = x_ref[...].astype(jnp.float32)
    y = y_ref[...].astype(jnp.float32)
    tile_rows = x.shape[0]

    def row_sum(p):
        # Reduce all trailing axes one at a time (lane reduce, then sublane
        # reduce), keeping dims so results stay per-leading-row.
        for ax in range(p.ndim - 1, 0, -1):
            p = jnp.sum(p, axis=ax, keepdims=True)
        return p

    # torch.nn.functional.normalize(p=2, dim=-1): x / max(||x||, eps).
    # Cosine-similarity form: ||x̂ - ŷ||² = sx·invx² + sy·invy² - 2·sxy·invx·invy
    # with inv = rsqrt(max(s, eps²))  (rsqrt runs on the EUP slot).
    if per_element:
        sx, sy, sxy = x * x, y * y, x * y            # length-1 rows: elementwise
    else:
        sx, sy, sxy = row_sum(x * x), row_sum(y * y), row_sum(x * y)

    inv_x = lax.rsqrt(jnp.maximum(sx, _EPS2))
    inv_y = lax.rsqrt(jnp.maximum(sy, _EPS2))
    contrib = (sx * (inv_x * inv_x) + sy * (inv_y * inv_y)
               - 2.0 * sxy * (inv_x * inv_y))
    if per_element:
        contrib = row_sum(contrib)                   # -> (tile_rows, 1)
    # contrib: (tile_rows, 1[, 1]) per-row loss.

    # Tail / dead-tile masking on per-row scalars only (cheap), and as a TRUE
    # select: out-of-bounds rows of a padded last block may hold garbage
    # (Inf/NaN) and must not be multiplied in.
    row0 = (c * tiles_per_core + i) * tile_rows
    rows = row0 + lax.broadcasted_iota(jnp.int32, contrib.shape, 0)
    contrib = jnp.where(rows < rows_total, contrib, 0.0)

    o_ref[...] += jnp.sum(contrib, axis=0, keepdims=True).reshape(1, 1)


def _pairwise_sum(x, y, *, per_element=False):
    """Pallas call: scalar sum of squared diffs of dim=-1-normalized rows.

    x, y: (R, L) / (R, H, W) with one normalization row per leading index,
          or a native (B, H) Linear activation when per_element=True.
    """
    assert x.shape == y.shape and x.ndim in (2, 3)
    R = int(x.shape[0])
    inner_shape = tuple(int(s) for s in x.shape[1:])
    rank = x.ndim
    x_item = jnp.dtype(x.dtype).itemsize
    y_item = jnp.dtype(y.dtype).itemsize

    # ---- VMEM-budgeted row tile (accounts for (8,128) padding and the f32
    # compute intermediates, not just the double-buffered input tiles). ------
    if rank == 3:
        H, W = inner_shape
        pad_x = _round_up(H, _row_pack(x.dtype)) * _round_up(W, _LANES)
        pad_y = _round_up(H, _row_pack(y.dtype)) * _round_up(W, _LANES)
        pad_f32 = _round_up(H, 8) * _round_up(W, _LANES)
        small = 4 * 8 * _LANES * 4      # conservative charge for (tr,1,1) temps
        row_align = 1                   # sublane dim is H (full) -> no constraint
    else:
        L = inner_shape[0]
        pad_x = pad_y = pad_f32 = _round_up(L, _LANES)
        small = 4 * _LANES * 4
        row_align = max(_row_pack(x.dtype), _row_pack(y.dtype))

    data_row_bytes = pad_x * x_item + pad_y * y_item            # x+y HBM per row
    per_row_bytes = 2 * data_row_bytes + 4 * pad_f32 * 4 + small
    tr = min(max(1, _tile_budget_bytes() // per_row_bytes), _TM_MAX)
    # Prefer >= _MIN_TILES pipeline steps, but keep >= ~1 MiB of data per step
    # so the ~0.35us per-step overhead stays hidden.
    tr_steps = max(1, -(-R // _MIN_TILES))
    min_rows_bw = max(1, _MIN_TILE_BYTES // max(1, data_row_bytes))
    tr = min(tr, max(tr_steps, min_rows_bw))
    if tr >= R:
        tr = R
    else:
        tr = max(row_align, (tr // row_align) * row_align)
        if row_align > 1:
            tr = max(8, tr)             # keep the (8,128) rule when tr < R
        tr = min(tr, R)

    nblk = -(-R // tr)                  # ceil(R / tr)
    nc = 2 if (_num_tensorcores() >= 2 and nblk >= 8) else 1
    tiles_per_core = -(-nblk // nc)
    last_blk = nblk - 1

    def in_map(c, i):
        # Dead tiles (past the end for the second core) are clamped onto the
        # last real tile; the in-kernel per-row mask zeroes their contribution.
        blk = jnp.minimum(c * tiles_per_core + i, last_blk)
        return (blk,) + (0,) * (rank - 1)

    kernel = functools.partial(
        _repalign_kernel, rows_total=R, tiles_per_core=tiles_per_core,
        per_element=per_element)

    block = (tr,) + inner_shape
    out = pl.pallas_call(
        kernel,
        out_shape=jax.ShapeDtypeStruct((nc, 1, 1), jnp.float32),
        grid=(nc, tiles_per_core),
        in_specs=[
            pl.BlockSpec(block, in_map),
            pl.BlockSpec(block, in_map),
        ],
        out_specs=pl.BlockSpec((None, 1, 1), lambda c, i: (c, 0, 0)),
        compiler_params=pltpu.CompilerParams(
            dimension_semantics=("parallel", "arbitrary"),
            vmem_limit_bytes=_vmem_limit_bytes()),
    )(x, y)
    return jnp.sum(out)


def _calculate_loss(x, y):
    """Mirror of RepAlignLoss.CalculateLoss: returns (loss_sum, numel)."""
    assert x.shape == y.shape
    if x.ndim <= 2:
        # view(B, H, -1) has inner length 1 -> the dim=-1 normalize is
        # per-element; process the native array (native dtype, no repack).
        x2 = x if x.ndim == 2 else x.reshape(1, -1)
        y2 = y if y.ndim == 2 else y.reshape(1, -1)
        return _pairwise_sum(x2, y2, per_element=True), int(x.size)

    R = int(x.shape[0]) * int(x.shape[1])
    inner = tuple(int(d) for d in x.shape[2:])
    if len(inner) == 1:
        # (B, S, L) -> (B*S, L): leading-dim merge, no HBM relayout.
        s = _pairwise_sum(x.reshape(R, inner[0]), y.reshape(R, inner[0]))
    elif len(inner) == 2:
        # Conv2d (B, C, H, W) -> (B*C, H, W): leading-dim merge only; the
        # kernel reduces over (H, W), avoiding the (B*C, H*W) relayout copy.
        s = _pairwise_sum(x.reshape((R,) + inner), y.reshape((R,) + inner))
    else:
        # TODO(synk): >4-D activations (e.g. Conv3d) fall back to a flat
        # (R, L) view, which costs one HBM relayout pass.
        L = 1
        for d in inner:
            L *= d
        s = _pairwise_sum(x.reshape(R, L), y.reshape(R, L))
    return s, int(x.size)


def rep_align_loss(X_VAL, Y_VAL, use_weight=False):
    """Mirror of RepAlignLoss.forward for lists of hooked activations."""
    n = len(X_VAL)
    weights = [i + 1 for i in range(n)]
    total_weight = sum(weights)
    loss = jnp.float32(0.0)
    elements = 0
    # TODO(synk): several small layers could share one pallas_call through a
    # scalar-prefetch (layer-id, row-offset) table; per-layer calls already
    # avoid the extra HBM pass that jnp.concatenate fusion would cost.
    for i in range(n):
        l, s = _calculate_loss(X_VAL[i], Y_VAL[i])
        if use_weight:
            l = l * (weights[i] / total_weight)
        loss = loss + l
        elements += s
    return loss / elements


def _reference_loss(X_VAL, Y_VAL, use_weight=False):
    """Pure-JAX reference of the PyTorch forward, for a sanity check."""
    weights = [i + 1 for i in range(len(X_VAL))]
    total_weight = sum(weights)
    loss = 0.0
    elements = 0
    for i, (x, y) in enumerate(zip(X_VAL, Y_VAL)):
        B, C = int(x.shape[0]), int(x.shape[1])
        x2 = x.reshape(B, C, -1).astype(jnp.float32)
        y2 = y.reshape(B, C, -1).astype(jnp.float32)
        xn = x2 / jnp.maximum(jnp.linalg.norm(x2, axis=-1, keepdims=True), _EPS)
        yn = y2 / jnp.maximum(jnp.linalg.norm(y2, axis=-1, keepdims=True), _EPS)
        l = jnp.sum((xn - yn) ** 2)
        if use_weight:
            l = l * (weights[i] / total_weight)
        loss = loss + l
        elements += int(x.size)
    return loss / elements


# TODO(synk): the backbone forward pass + forward-hook activation capture
# (MakeData / traverse_modules) is external to the loss math and is not
# translated; this script consumes the hooked activation lists directly.

if __name__ == "__main__":
    key = jax.random.PRNGKey(0)
    ks = jax.random.split(key, 8)

    # Synthetic "hooked" activations: Conv2d -> NCHW, Linear -> (B, H) / (B, S, H).
    x_conv1 = jax.random.normal(ks[0], (2, 4, 16, 16), dtype=jnp.float32)
    y_conv1 = jax.random.normal(ks[1], (2, 4, 16, 16), dtype=jnp.float32)
    x_conv2 = jax.random.normal(ks[2], (2, 8, 8, 8), dtype=jnp.float32)
    y_conv2 = jax.random.normal(ks[3], (2, 8, 8, 8), dtype=jnp.float32)
    x_seq = jax.random.normal(ks[4], (2, 8, 32), dtype=jnp.float32)
    y_seq = jax.random.normal(ks[5], (2, 8, 32), dtype=jnp.float32)
    x_lin = jax.random.normal(ks[6], (2, 32), dtype=jnp.float32)
    y_lin = jax.random.normal(ks[7], (2, 32), dtype=jnp.float32)

    X_VAL = [x_conv1, x_conv2, x_seq, x_lin]
    Y_VAL = [y_conv1, y_conv2, y_seq, y_lin]

    out = jax.block_until_ready(rep_align_loss(X_VAL, Y_VAL, use_weight=False))
    ref = jax.block_until_ready(_reference_loss(X_VAL, Y_VAL, use_weight=False))
    assert jnp.allclose(out, ref, rtol=1e-4, atol=1e-6), (out, ref)

    out_w = jax.block_until_ready(rep_align_loss(X_VAL, Y_VAL, use_weight=True))
    ref_w = jax.block_until_ready(_reference_loss(X_VAL, Y_VAL, use_weight=True))
    assert jnp.allclose(out_w, ref_w, rtol=1e-4, atol=1e-6), (out_w, ref_w)

    print("KERNEL_OK")
</pallas_src>

<mosaic_0001>
module attributes {stable_mosaic.version = 11 : i64} {
  func.func @_repalign_kernel(%arg0: i32, %arg1: i32, %arg2: memref<8x16x16xf32, #tpu.memory_space<vmem>>, %arg3: memref<8x16x16xf32, #tpu.memory_space<vmem>>, %arg4: memref<1x1x1xf32, #tpu.memory_space<vmem>>) attributes {dimension_semantics = [#tpu.dimension_semantics<parallel>, #tpu.dimension_semantics<arbitrary>], iteration_bounds = array<i64: 1, 1>, scalar_prefetch = 0 : i64, scratch_operands = 0 : i64, tpu.core_type = #tpu.core_type<tc>, window_params = [{transform_indices = @transform_0, window_bounds = array<i64: 8, 16, 16>}, {transform_indices = @transform_1, window_bounds = array<i64: 8, 16, 16>}, {transform_indices = @transform_2, window_bounds = array<i64: 1, 1, 1>}]} {
    %c0_i32 = arith.constant 0 : i32
    %0 = arith.cmpi eq, %arg1, %c0_i32 : i32
    %1 = arith.extui %0 : i1 to i32
    %c0_i32_0 = arith.constant 0 : i32
    %2 = arith.cmpi ne, %1, %c0_i32_0 : i32
    scf.if %2 {
      %cst_23 = arith.constant 0.000000e+00 : f32
      %55 = vector.broadcast %cst_23 : f32 to vector<1x1xf32>
      %c0_24 = arith.constant 0 : index
      %c0_25 = arith.constant 0 : index
      %c0_26 = arith.constant 0 : index
      %56 = vector.load %arg4[%c0_24, %c0_25, %c0_26] : memref<1x1x1xf32, #tpu.memory_space<vmem>>, vector<1x1x1xf32>
      %57 = vector.shape_cast %56 : vector<1x1x1xf32> to vector<1x1xf32>
      %58 = vector.shape_cast %55 : vector<1x1xf32> to vector<1x1x1xf32>
      tpu.vector_store %arg4[%c0_24, %c0_25, %c0_26], %58 {strides = array<i32>} : memref<1x1x1xf32, #tpu.memory_space<vmem>>, vector<1x1x1xf32>,
    } else {
    }
    %c0 = arith.constant 0 : index
    %c0_1 = arith.constant 0 : index
    %c0_2 = arith.constant 0 : index
    %3 = vector.load %arg2[%c0, %c0_1, %c0_2] : memref<8x16x16xf32, #tpu.memory_space<vmem>>, vector<8x16x16xf32>
    %c0_3 = arith.constant 0 : index
    %c0_4 = arith.constant 0 : index
    %c0_5 = arith.constant 0 : index
    %4 = vector.load %arg3[%c0_3, %c0_4, %c0_5] : memref<8x16x16xf32, #tpu.memory_space<vmem>>, vector<8x16x16xf32>
    %5 = arith.mulf %3, %3 : vector<8x16x16xf32>
    %cst = arith.constant dense<0.000000e+00> : vector<8x16xf32>
    %6 = vector.multi_reduction <add>, %5, %cst [2] : vector<8x16x16xf32> to vector<8x16xf32>
    %7 = vector.shape_cast %6 : vector<8x16xf32> to vector<8x16x1xf32>
    %cst_6 = arith.constant dense<0.000000e+00> : vector<8x1xf32>
    %8 = vector.multi_reduction <add>, %7, %cst_6 [1] : vector<8x16x1xf32> to vector<8x1xf32>
    %9 = vector.shape_cast %8 : vector<8x1xf32> to vector<8x1x1xf32>
    %10 = arith.mulf %4, %4 : vector<8x16x16xf32>
    %cst_7 = arith.constant dense<0.000000e+00> : vector<8x16xf32>
    %11 = vector.multi_reduction <add>, %10, %cst_7 [2] : vector<8x16x16xf32> to vector<8x16xf32>
    %12 = vector.shape_cast %11 : vector<8x16xf32> to vector<8x16x1xf32>
    %cst_8 = arith.constant dense<0.000000e+00> : vector<8x1xf32>
    %13 = vector.multi_reduction <add>, %12, %cst_8 [1] : vector<8x16x1xf32> to vector<8x1xf32>
    %14 = vector.shape_cast %13 : vector<8x1xf32> to vector<8x1x1xf32>
    %15 = arith.mulf %3, %4 : vector<8x16x16xf32>
    %cst_9 = arith.constant dense<0.000000e+00> : vector<8x16xf32>
    %16 = vector.multi_reduction <add>, %15, %cst_9 [2] : vector<8x16x16xf32> to vector<8x16xf32>
    %17 = vector.shape_cast %16 : vector<8x16xf32> to vector<8x16x1xf32>
    %cst_10 = arith.constant dense<0.000000e+00> : vector<8x1xf32>
    %18 = vector.multi_reduction <add>, %17, %cst_10 [1] : vector<8x16x1xf32> to vector<8x1xf32>
    %19 = vector.shape_cast %18 : vector<8x1xf32> to vector<8x1x1xf32>
    %cst_11 = arith.constant 1.000000e-24 : f32
    %20 = vector.broadcast %cst_11 : f32 to vector<8x1x1xf32>
    %21 = arith.maximumf %9, %20 : vector<8x1x1xf32>
    %22 = math.rsqrt %21 : vector<8x1x1xf32>
    %cst_12 = arith.constant 1.000000e-24 : f32
    %23 = vector.broadcast %cst_12 : f32 to vector<8x1x1xf32>
    %24 = arith.maximumf %14, %23 : vector<8x1x1xf32>
    %25 = math.rsqrt %24 : vector<8x1x1xf32>
    %26 = arith.mulf %22, %22 : vector<8x1x1xf32>
    %27 = arith.mulf %9, %26 : vector<8x1x1xf32>
    %28 = arith.mulf %25, %25 : vector<8x1x1xf32>
    %29 = arith.mulf %14, %28 : vector<8x1x1xf32>
    %30 = arith.addf %27, %29 : vector<8x1x1xf32>
    %cst_13 = arith.constant 2.000000e+00 : f32
    %31 = vector.broadcast %cst_13 : f32 to vector<8x1x1xf32>
    %32 = arith.mulf %31, %19 : vector<8x1x1xf32>
    %33 = arith.mulf %22, %25 : vector<8x1x1xf32>
    %34 = arith.mulf %32, %33 : vector<8x1x1xf32>
    %35 = arith.subf %30, %34 : vector<8x1x1xf32>
    %c1_i32 = arith.constant 1 : i32
    %36 = arith.muli %arg0, %c1_i32 : i32
    %37 = arith.addi %36, %arg1 : i32
    %c8_i32 = arith.constant 8 : i32
    %38 = arith.muli %37, %c8_i32 : i32
    %39 = tpu.iota {dimensions = array<i32: 0>} : vector<8x1x1xi32>
    %40 = vector.broadcast %38 : i32 to vector<8x1x1xi32>
    %41 = arith.addi %40, %39 : vector<8x1x1xi32>
    %c8_i32_14 = arith.constant 8 : i32
    %42 = vector.broadcast %c8_i32_14 : i32 to vector<8x1x1xi32>
    %43 = arith.cmpi slt, %41, %42 : vector<8x1x1xi32>
    %cst_15 = arith.constant 0.000000e+00 : f32
    %44 = vector.broadcast %cst_15 : f32 to vector<8x1x1xf32>
    %45 = arith.select %43, %35, %44 : vector<8x1x1xi1>, vector<8x1x1xf32>
    %c0_16 = arith.constant 0 : index
    %c0_17 = arith.constant 0 : index
    %c0_18 = arith.constant 0 : index
    %46 = vector.load %arg4[%c0_16, %c0_17, %c0_18] : memref<1x1x1xf32, #tpu.memory_space<vmem>>, vector<1x1x1xf32>
    %47 = vector.shape_cast %46 : vector<1x1x1xf32> to vector<1x1xf32>
    %cst_19 = arith.constant dense<0.000000e+00> : vector<1x1xf32>
    %48 = vector.multi_reduction <add>, %45, %cst_19 [0] : vector<8x1x1xf32> to vector<1x1xf32>
    %49 = vector.shape_cast %48 : vector<1x1xf32> to vector<1x1x1xf32>
    %50 = vector.shape_cast %49 : vector<1x1x1xf32> to vector<1x1xf32>
    %51 = arith.addf %47, %50 : vector<1x1xf32>
    %c0_20 = arith.constant 0 : index
    %c0_21 = arith.constant 0 : index
    %c0_22 = arith.constant 0 : index
    %52 = vector.load %arg4[%c0_20, %c0_21, %c0_22] : memref<1x1x1xf32, #tpu.memory_space<vmem>>, vector<1x1x1xf32>
    %53 = vector.shape_cast %52 : vector<1x1x1xf32> to vector<1x1xf32>
    %54 = vector.shape_cast %51 : vector<1x1xf32> to vector<1x1x1xf32>
    tpu.vector_store %arg4[%c0_20, %c0_21, %c0_22], %54 {strides = array<i32>} : memref<1x1x1xf32, #tpu.memory_space<vmem>>, vector<1x1x1xf32>,
    return
  }
  func.func @transform_0(%arg0: i32, %arg1: i32) -> (i32, i32, i32) {
    %c1_i32 = arith.constant 1 : i32
    %0 = arith.muli %arg0, %c1_i32 : i32
    %1 = arith.addi %0, %arg1 : i32
    %c0_i32 = arith.constant 0 : i32
    %2 = arith.minsi %1, %c0_i32 : i32
    %c0_i32_0 = arith.constant 0 : i32
    %c0_i32_1 = arith.constant 0 : i32
    %c0_i32_2 = arith.constant 0 : i32
    return %2, %c0_i32_0, %c0_i32_1 : i32, i32, i32
  }
  func.func @transform_1(%arg0: i32, %arg1: i32) -> (i32, i32, i32) {
    %c1_i32 = arith.constant 1 : i32
    %0 = arith.muli %arg0, %c1_i32 : i32
    %1 = arith.addi %0, %arg1 : i32
    %c0_i32 = arith.constant 0 : i32
    %2 = arith.minsi %1, %c0_i32 : i32
    %c0_i32_0 = arith.constant 0 : i32
    %c0_i32_1 = arith.constant 0 : i32
    %c0_i32_2 = arith.constant 0 : i32
    return %2, %c0_i32_0, %c0_i32_1 : i32, i32, i32
  }
  func.func @transform_2(%arg0: i32, %arg1: i32) -> (i32, i32, i32) {
    %c0_i32 = arith.constant 0 : i32
    %c0_i32_0 = arith.constant 0 : i32
    %c0_i32_1 = arith.constant 0 : i32
    return %arg0, %c0_i32, %c0_i32_0 : i32, i32, i32
  }
}

</mosaic_0001>

<bundles_post_ra>
// kernel: tpu_custom_call.1
= control target key start
LH: loop header
LB: loop body
LE: loop exit
PB: predicated region body
PF: predicated region fallthrough
CT: control target
= control target key end

     0   :  { %7 = vsyncpa [#allocation3], 0  ;;  %s1050_s0 = inlined_call_operand.hbm [shape: f32[8,16,16], index: 0, kind: input, shape index: {}]   ;;  %s1051_s1 = inlined_call_operand.hbm [shape: f32[8,16,16], index: 1, kind: input, shape index: {}]   ;;  %s1052_s2 = inlined_call_operand.hbm [shape: f32[1,1,1], index: 2, kind: output, shape index: {}]  }
   0x1   :  { %8 = vsyncpa [#allocation6], 0 }
   0x2   :  { %9 = vsyncpa [#allocation4], 0  ;;  %s732_s9 = smov [#allocation2]   ;;  %s660_s13 = scalar_lea.hbm %s1050_s0, 2048 }
   0x3   :  { %s22_s10 = sshll.u32 %s732_s9, 4  ;;  %p661_p0 = scmp.ne.s32.totalorder %s1050_s0, %s660_s13  ;;  %s23_s10 = int_to_ptr.vmem [resolvable:$true] %s22_s10 }
   0x4   :  { %p664_p1 = scmp.lt.u32.totalorder %s660_s13, %s1050_s0 }
   0x6   :  { %p666_p2 = pnand %p664_p1, %p661_p0 }
   0x8   :  { %669 = shalt.err (!%p666_p2)
}
   0x9   :  { %s670_s18 = scalar_lea.vmem %s23_s10, 2048  ;;  %p675_p4 = scmp.lt.s32.totalorder %s23_s10, %s23_s10 }
   0xa   :  { %p671_p3 = scmp.ne.s32.totalorder %s23_s10, %s670_s18  ;;  %p676_p5 = scmp.lt.s32.totalorder %s670_s18, %s670_s18 }
   0xc   :  { %p677_p6 = por %p676_p5, %p675_p4 }
   0xe   :  { %p678_p7 = pnand %p677_p6, %p671_p3 }
  0x10   :  { %681 = shalt.err (!%p678_p7)
}
  0x11   :  { %s733_s19 = smov 128   ;;  %s734_s20 = smov 8  }
  0x12   :  { %28 = dma.hbm_to_vmem [thread:$0]  %s1050_s0, 2048, %s23_s10, [#allocation3], %s733_s19, %s733_s19, %s734_s20  }
  0x13   :  { %s735_s23 = smov [#allocation5]   ;;  %s682_s27 = scalar_lea.hbm %s1051_s1, 2048 }
  0x14   :  { %s41_s24 = sshll.u32 %s735_s23, 4  ;;  %p683_p8 = scmp.ne.s32.totalorder %s1051_s1, %s682_s27  ;;  %s42_s24 = int_to_ptr.vmem [resolvable:$true] %s41_s24 }
  0x15   :  { %p686_p9 = scmp.lt.u32.totalorder %s682_s27, %s1051_s1 }
  0x17   :  { %p688_p10 = pnand %p686_p9, %p683_p8 }
  0x19   :  { %691 = shalt.err (!%p688_p10)
}
  0x1a   :  { %s692_s4 = scalar_lea.vmem %s42_s24, 2048  ;;  %p697_p12 = scmp.lt.s32.totalorder %s42_s24, %s42_s24 }
  0x1b   :  { %p693_p11 = scmp.ne.s32.totalorder %s42_s24, %s692_s4  ;;  %p698_p13 = scmp.lt.s32.totalorder %s692_s4, %s692_s4 }
  0x1d   :  { %p699_p0 = por %p698_p13, %p697_p12 }
  0x1f   :  { %p700_p1 = pnand %p699_p0, %p693_p11 }
  0x21   :  { %703 = shalt.err (!%p700_p1)
}
  0x22   :  { %47 = dma.hbm_to_vmem [thread:$0]  %s1051_s1, 2048, %s42_s24, [#allocation6], %s733_s19, %s733_s19, %s734_s20  }
  0x23   :  { %726 = dma.done.wait [#allocation3], 2048  }
  0x24   :  { %727 = vsyncadd [#allocation3], 4294965248 }
  0x25   :  { %728 = dma.done.wait [#allocation6], 2048  }
  0x26   :  { %729 = vsyncadd [#allocation6], 4294965248  ;;  %v70_v0 = vld [vmem:[#allocation2 + $0x10] sm:$0xff]  ;;  %vm116_vm0 = vcmask 130048   ;;  %v68_v1 = vld [vmem:[#allocation2] sm:$0xff]  ;;  %vm66_vm1 = vcmask 0  }
  0x27   :  { %v71_v2 = vld [vmem:[#allocation2 + $0x18] sm:$0xff]  ;;  %v102_v3 = vmul.f32 %v70_v0, %v70_v0  ;;  %v100_v4 = vmul.f32 %v68_v1, %v68_v1  ;;  %v777_v6 = vld [vmem:[#allocation2 + $0x8] sm:$0xff]  ;;  %v84_v9 = vld [vmem:[#allocation5] sm:$0xff]  ;;  %s737_s1 = smov [#allocation7]  }
  0x28   :  { %v103_v5 = vmul.f32 %v71_v2, %v71_v2  ;;  %v101_v7 = vmul.f32 %v777_v6, %v777_v6  ;;  %v781_v8 = vld [vmem:[#allocation5 + $0x8] sm:$0xff]  ;;  %v221_v15 = vmul.f32 %v84_v9, %v84_v9  ;;  %v87_v16 = vld [vmem:[#allocation5 + $0x18] sm:$0xff]  ;;  %v86_v17 = vld [vmem:[#allocation5 + $0x10] sm:$0xff]  ;;  %v341_v34 = vmul.f32 %v84_v9, %v68_v1  ;;  %s608_s6 = sshll.u32 %s737_s1, 4  ;;  %s609_s6 = int_to_ptr.vmem [resolvable:$true] %s608_s6 }
  0x29   :  { %v123_v10 = vsel %vm116_vm0, %v102_v3, 0.0  ;;  %v117_v11 = vsel %vm116_vm0, %v100_v4, 0.0  ;;  %v222_v14 = vmul.f32 %v781_v8, %v781_v8  ;;  %v224_v20 = vmul.f32 %v87_v16, %v87_v16  ;;  %v791_v22 = vld [vmem:[#allocation2 + $0x28] sm:$0xff]  ;;  %v793_v23 = vld [vmem:[#allocation2 + $0x20] sm:$0xff]  ;;  %v811_v36 = vld [vmem:[#allocation2 + $0x38] sm:$0xff]  ;;  %s704_s7 = scalar_lea.vmem %s609_s6, 16  ;;  %p709_p3 = scmp.lt.s32.totalorder %s609_s6, %s609_s6 }
  0x2a   :  { %124 = vadd.xlane.f32.xlu1 %v123_v10  ;;  %118 = vadd.xlane.f32.xlu0 %v117_v11  ;;  %v126_v12 = vsel %vm116_vm0, %v103_v5, 0.0  ;;  %v120_v13 = vsel %vm116_vm0, %v101_v7, 0.0  ;;  %v237_v19 = vsel %vm116_vm0, %v221_v15, 0.0  ;;  %v223_v21 = vmul.f32 %v86_v17, %v86_v17  ;;  %v801_v28 = vld [vmem:[#allocation5 + $0x28] sm:$0xff]  ;;  %v803_v29 = vld [vmem:[#allocation5 + $0x20] sm:$0xff]  ;;  %v813_v37 = vld [vmem:[#allocation2 + $0x30] sm:$0xff]  ;;  %p705_p2 = scmp.ne.s32.totalorder %s609_s6, %s704_s7 }
  0x2b   :  { %v240_v18 = vsel %vm116_vm0, %v222_v14, 0.0  ;;  %v246_v24 = vsel %vm116_vm0, %v224_v20, 0.0  ;;  %v105_v26 = vmul.f32 %v791_v22, %v791_v22  ;;  %v104_v27 = vmul.f32 %v793_v23, %v793_v23  ;;  %v830_v46 = vld [vmem:[#allocation5 + $0x38] sm:$0xff]  ;;  %v832_v47 = vld [vmem:[#allocation5 + $0x30] sm:$0xff]  ;;  %v840_v52 = vld [vmem:[#allocation2 + $0x48] sm:$0xff]  ;;  %s708_s8 = scalar_lea.vmem %s609_s6, 32 }
  0x2c   :  { %v243_v25 = vsel %vm116_vm0, %v223_v21, 0.0  ;;  %v226_v30 = vmul.f32 %v801_v28, %v801_v28  ;;  %v225_v31 = vmul.f32 %v803_v29, %v803_v29  ;;  %v344_v35 = vmul.f32 %v87_v16, %v71_v2  ;;  %v842_v53 = vld [vmem:[#allocation2 + $0x40] sm:$0xff]  ;;  %v850_v58 = vld [vmem:[#allocation5 + $0x48] sm:$0xff]  ;;  %v862_v1 = vld [vmem:[#allocation2 + $0x50] sm:$0xff]  ;;  %p710_p4 = scmp.lt.s32.totalorder %s708_s8, %s704_s7 }
  0x2d   :  { %v132_v32 = vsel %vm116_vm0, %v105_v26, 0.0  ;;  %v129_v33 = vsel %vm116_vm0, %v104_v27, 0.0  ;;  %v343_v38 = vmul.f32 %v86_v17, %v70_v0  ;;  %v816_v39 = vsel %vm116_vm0, %v341_v34, 0.0  ;;  %v852_v59 = vld [vmem:[#allocation5 + $0x40] sm:$0xff]  ;;  %v860_v0 = vld [vmem:[#allocation2 + $0x58] sm:$0xff]  ;;  %v872_v9 = vld [vmem:[#allocation5 + $0x50] sm:$0xff] }
  0x2e   :  { %127 = vadd.xlane.f32.xlu1 %v126_v12  ;;  %121 = vadd.xlane.f32.xlu0 %v120_v13  ;;  %v819_v40 = vsel %vm116_vm0, %v344_v35, 0.0  ;;  %v252_v42 = vsel %vm116_vm0, %v226_v30, 0.0  ;;  %v249_v43 = vsel %vm116_vm0, %v225_v31, 0.0  ;;  %v107_v44 = vmul.f32 %v811_v36, %v811_v36  ;;  %v870_v7 = vld [vmem:[#allocation5 + $0x58] sm:$0xff]  ;;  %v880_v14 = vld [vmem:[#allocation2 + $0x68] sm:$0xff]  ;;  %v882_v15 = vld [vmem:[#allocation2 + $0x60] sm:$0xff]  ;;  %p711_p5 = por %p710_p4, %p709_p3 }
  0x2f   :  { %v822_v41 = vsel %vm116_vm0, %v343_v38, 0.0  ;;  %v106_v45 = vmul.f32 %v813_v37, %v813_v37  ;;  %v228_v50 = vmul.f32 %v830_v46, %v830_v46  ;;  %v227_v51 = vmul.f32 %v832_v47, %v832_v47  ;;  %v97_v20 = vld [vmem:[#allocation5 + $0x68] sm:$0xff]  ;;  %v96_v21 = vld [vmem:[#allocation5 + $0x60] sm:$0xff]  ;;  %v83_v30 = vld [vmem:[#allocation2 + $0x78] sm:$0xff] }
  0x30   :  { %v138_v48 = vsel %vm116_vm0, %v107_v44, 0.0  ;;  %v109_v56 = vmul.f32 %v840_v52, %v840_v52  ;;  %v108_v57 = vmul.f32 %v842_v53, %v842_v53  ;;  %v230_v62 = vmul.f32 %v850_v58, %v850_v58  ;;  %v82_v31 = vld [vmem:[#allocation2 + $0x70] sm:$0xff]  ;;  %v99_v38 = vld [vmem:[#allocation5 + $0x78] sm:$0xff]  ;;  %p712_p6 = pnand %p711_p5, %p705_p2 }
  0x31   :  { %v135_v49 = vsel %vm116_vm0, %v106_v45, 0.0  ;;  %v258_v54 = vsel %vm116_vm0, %v228_v50, 0.0  ;;  %v255_v55 = vsel %vm116_vm0, %v227_v51, 0.0  ;;  %v229_v63 = vmul.f32 %v852_v59, %v852_v59 }
  0x32   :  { %241 = vadd.xlane.f32.xlu1 %v240_v18  ;;  %238 = vadd.xlane.f32.xlu0 %v237_v19  ;;  %v144_v60 = vsel %vm116_vm0, %v109_v56, 0.0  ;;  %v141_v61 = vsel %vm116_vm0, %v108_v57, 0.0  ;;  %v264_v2 = vsel %vm116_vm0, %v230_v62, 0.0  ;;  %v111_v4 = vmul.f32 %v860_v0, %v860_v0 }
  0x33   :  { %v261_v3 = vsel %vm116_vm0, %v229_v63, 0.0  ;;  %v110_v5 = vmul.f32 %v862_v1, %v862_v1  ;;  %v232_v12 = vmul.f32 %v870_v7, %v870_v7  ;;  %v231_v13 = vmul.f32 %v872_v9, %v872_v9 }
  0x34   :  { %v150_v10 = vsel %vm116_vm0, %v111_v4, 0.0  ;;  %v113_v18 = vmul.f32 %v880_v14, %v880_v14  ;;  %v112_v19 = vmul.f32 %v882_v15, %v882_v15  ;;  %v234_v26 = vmul.f32 %v97_v20, %v97_v20 }
  0x35   :  { %v147_v11 = vsel %vm116_vm0, %v110_v5, 0.0  ;;  %v270_v16 = vsel %vm116_vm0, %v232_v12, 0.0  ;;  %v267_v17 = vsel %vm116_vm0, %v231_v13, 0.0  ;;  %v233_v27 = vmul.f32 %v96_v21, %v96_v21 }
  0x36   :  { %247 = vadd.xlane.f32.xlu1 %v246_v24  ;;  %244 = vadd.xlane.f32.xlu0 %v243_v25  ;;  %v156_v24 = vsel %vm116_vm0, %v113_v18, 0.0  ;;  %v153_v25 = vsel %vm116_vm0, %v112_v19, 0.0  ;;  %v115_v34 = vmul.f32 %v83_v30, %v83_v30  ;;  %v114_v35 = vmul.f32 %v82_v31, %v82_v31 }
  0x37   :  { %v236_v45 = vmul.f32 %v99_v38, %v99_v38  ;;  %v342_v51 = vmul.f32 %v781_v8, %v777_v6  ;;  %v345_v56 = vmul.f32 %v803_v29, %v793_v23  ;;  %v348_v8 = vmul.f32 %v830_v46, %v811_v36 }
  0x38   :  { %v159_v44 = vsel %vm116_vm0, %v114_v35, 0.0  ;;  %v349_v29 = vmul.f32 %v852_v59, %v842_v53  ;;  %v353_v53 = vmul.f32 %v96_v21, %v882_v15 }
  0x39   :  { %v369_v6 = vsel %vm116_vm0, %v345_v56, 0.0 }
  0x3a   :  { %133 = vadd.xlane.f32.xlu1 %v132_v32  ;;  %130 = vadd.xlane.f32.xlu0 %v129_v33  ;;  %v276_v32 = vsel %vm116_vm0, %v234_v26, 0.0  ;;  %v273_v33 = vsel %vm116_vm0, %v233_v27, 0.0  ;;  %v381_v36 = vsel %vm116_vm0, %v349_v29, 0.0  ;;  %v393_v59 = vsel %vm116_vm0, %v353_v53, 0.0 }
  0x3e   :  { %253 = vadd.xlane.f32.xlu1 %v252_v42  ;;  %250 = vadd.xlane.f32.xlu0 %v249_v43  ;;  %v98_v42 = vld [vmem:[#allocation5 + $0x70] sm:$0xff]  ;;  %v162_v43 = vsel %vm116_vm0, %v115_v34, 0.0 }
  0x42   :  { %139 = vadd.xlane.f32.xlu1 %v138_v48  ;;  %136 = vadd.xlane.f32.xlu0 %v135_v49  ;;  %v235_v48 = vmul.f32 %v98_v42, %v98_v42  ;;  %v282_v49 = vsel %vm116_vm0, %v236_v45, 0.0 }
  0x44   :  { %v279_v50 = vsel %vm116_vm0, %v235_v48, 0.0 }
  0x46   :  { %259 = vadd.xlane.f32.xlu1 %v258_v54  ;;  %256 = vadd.xlane.f32.xlu0 %v255_v55  ;;  %v360_v54 = vsel %vm116_vm0, %v342_v51, 0.0  ;;  %v346_v55 = vmul.f32 %v801_v28, %v791_v22  ;;  %v378_v22 = vsel %vm116_vm0, %v348_v8, 0.0  ;;  %v350_v28 = vmul.f32 %v850_v58, %v840_v52 }
  0x47   :  { %v354_v52 = vmul.f32 %v97_v20, %v880_v14 }
  0x48   :  { %v372_v57 = vsel %vm116_vm0, %v346_v55, 0.0 }
  0x49   :  { %v396_v58 = vsel %vm116_vm0, %v354_v52, 0.0 }
  0x4a   :  { %145 = vadd.xlane.f32.xlu1 %v144_v60  ;;  %142 = vadd.xlane.f32.xlu0 %v141_v61  ;;  %v356_v60 = vmul.f32 %v99_v38, %v83_v30  ;;  %v355_v61 = vmul.f32 %v98_v42, %v82_v31 }
  0x4c   :  { %v402_v62 = vsel %vm116_vm0, %v356_v60, 0.0  ;;  %v399_v63 = vsel %vm116_vm0, %v355_v61, 0.0 }
  0x4e   :  { %265 = vadd.xlane.f32.xlu1 %v264_v2  ;;  %262 = vadd.xlane.f32.xlu0 %v261_v3 }
  0x52   :  { %151 = vadd.xlane.f32.xlu1 %v150_v10  ;;  %148 = vadd.xlane.f32.xlu0 %v147_v11 }
  0x56   :  { %271 = vadd.xlane.f32.xlu1 %v270_v16  ;;  %268 = vadd.xlane.f32.xlu0 %v267_v17 }
  0x5a   :  { %157 = vadd.xlane.f32.xlu1 %v156_v24  ;;  %154 = vadd.xlane.f32.xlu0 %v153_v25 }
  0x5e   :  { %277 = vadd.xlane.f32.xlu1 %v276_v32  ;;  %274 = vadd.xlane.f32.xlu0 %v273_v33 }
  0x62   :  { %163 = vadd.xlane.f32.xlu1 %v162_v43  ;;  %160 = vadd.xlane.f32.xlu0 %v159_v44 }
  0x66   :  { %283 = vadd.xlane.f32.xlu1 %v282_v49  ;;  %280 = vadd.xlane.f32.xlu0 %v279_v50 }
  0x6a   :  { %361 = vadd.xlane.f32.xlu1 %v360_v54  ;;  %358 = vadd.xlane.f32.xlu0 %v816_v39  ;;  %v347_v39 = vmul.f32 %v832_v47, %v813_v37  ;;  %v352_v37 = vmul.f32 %v870_v7, %v860_v0  ;;  %v736_v0 = vmov 0.0  }
  0x6b   :  { %67 = vst.msk [vmem:[#allocation7] sm:$0x1] %vm66_vm1, %v736_v0 }
  0x6c   :  { %v375_v23 = vsel %vm116_vm0, %v347_v39, 0.0  ;;  %v390_v46 = vsel %vm116_vm0, %v352_v37, 0.0 }
  0x6e   :  { %367 = vadd.xlane.f32.xlu1 %v819_v40  ;;  %364 = vadd.xlane.f32.xlu0 %v822_v41  ;;  %v384_v40 = vsel %vm116_vm0, %v350_v28, 0.0  ;;  %v351_v41 = vmul.f32 %v872_v9, %v862_v1 }
  0x70   :  { %v387_v47 = vsel %vm116_vm0, %v351_v41, 0.0 }
  0x72   :  { %373 = vadd.xlane.f32.xlu1 %v372_v57  ;;  %370 = vadd.xlane.f32.xlu0 %v369_v6 }
  0x76   :  { %379 = vadd.xlane.f32.xlu1 %v378_v22  ;;  %376 = vadd.xlane.f32.xlu0 %v375_v23 }
  0x7a   :  { %385 = vadd.xlane.f32.xlu1 %v384_v40  ;;  %382 = vadd.xlane.f32.xlu0 %v381_v36 }
  0x7e   :  { %391 = vadd.xlane.f32.xlu1 %v390_v46  ;;  %388 = vadd.xlane.f32.xlu0 %v387_v47 }
  0x82   :  { %397 = vadd.xlane.f32.xlu1 %v396_v58  ;;  %394 = vadd.xlane.f32.xlu0 %v393_v59 }
  0x86   :  { %403 = vadd.xlane.f32.xlu1 %v402_v62  ;;  %400 = vadd.xlane.f32.xlu0 %v399_v63 }
  0xb7   :  { %v125_v1 = vpop.xlane.xlu1 %124  ;;  %v119_v2 = vpop.xlane.xlu0 %118 }
  0xbb   :  { %v128_v3 = vpop.xlane.xlu1 %127  ;;  %v122_v4 = vpop.xlane.xlu0 %121 }
  0xbc   :  { %v172_v9 = vadd.f32 %v128_v3, %v125_v1  ;;  %v165_v12 = vadd.f32 %v122_v4, %v119_v2 }
  0xbe   :  { %v173_v14 = vrot.slane %v172_v9, 4  ;;  %v166_v17 = vrot.slane %v165_v12, 4 }
  0xbf   :  { %v242_v5 = vpop.xlane.xlu1 %241  ;;  %v239_v7 = vpop.xlane.xlu0 %238 }
  0xc0   :  { %v285_v13 = vadd.f32 %v242_v5, %v239_v7  ;;  %v174_v20 = vadd.f32 %v173_v14, %v172_v9  ;;  %v167_v25 = vadd.f32 %v166_v17, %v165_v12 }
  0xc2   :  { %v286_v18 = vrot.slane %v285_v13, 4  ;;  %v175_v30 = vrot.slane %v174_v20, 2  ;;  %v168_v33 = vrot.slane %v167_v25, 2 }
  0xc3   :  { %v248_v10 = vpop.xlane.xlu1 %247  ;;  %v245_v11 = vpop.xlane.xlu0 %244 }
  0xc4   :  { %v292_v19 = vadd.f32 %v248_v10, %v245_v11  ;;  %v287_v26 = vadd.f32 %v286_v18, %v285_v13  ;;  %v176_v38 = vadd.f32 %v175_v30, %v174_v20  ;;  %v169_v48 = vadd.f32 %v168_v33, %v167_v25 }
  0xc6   :  { %v293_v27 = vrot.slane %v292_v19, 4  ;;  %v288_v34 = vrot.slane %v287_v26, 2  ;;  %v177_v51 = vrot.slane %v176_v38, 1  ;;  %v170_v6 = vrot.slane %v169_v48, 1 }
  0xc7   :  { %v134_v15 = vpop.xlane.xlu1 %133  ;;  %v131_v16 = vpop.xlane.xlu0 %130 }
  0xc8   :  { %v294_v35 = vadd.f32 %v293_v27, %v292_v19  ;;  %v179_v42 = vadd.f32 %v134_v15, %v131_v16  ;;  %v289_v49 = vadd.f32 %v288_v34, %v287_v26  ;;  %v935_v22 = vadd.f32 %v177_v51, %v176_v38 }
  0xc9   :  { %v937_v36 = vadd.f32 %v170_v6, %v169_v48 }
  0xca   :  { %v295_v50 = vrot.slane %v294_v35, 2  ;;  %v180_v54 = vrot.slane %v179_v42, 4  ;;  %v290_v8 = vrot.slane %v289_v49, 1  ;;  %v462_v47 = vmax.f32 %v935_v22, 1e-24 }
  0xcb   :  { %v254_v21 = vpop.xlane.xlu1 %253  ;;  %v251_v24 = vpop.xlane.xlu0 %250  ;;  %v461_v60 = vmax.f32 %v937_v36, 1e-24 }
  0xcc   :  { %v299_v43 = vadd.f32 %v254_v21, %v251_v24  ;;  %v296_v39 = vadd.f32 %v295_v50, %v294_v35  ;;  %v181_v23 = vadd.f32 %v180_v54, %v179_v42  ;;  %v939_v41 = vadd.f32 %v290_v8, %v289_v49 }
  0xcd   :  { %628 = vrsqrt.f32 %v462_v47 }
  0xce   :  { %v300_v55 = vrot.slane %v299_v43, 4  ;;  %v297_v46 = vrot.slane %v296_v39, 1  ;;  %v182_v52 = vrot.slane %v181_v23, 2  ;;  %v477_v63 = vmax.f32 %v939_v41, 1e-24 }
  0xcf   :  { %v140_v31 = vpop.xlane.xlu1 %139  ;;  %v137_v32 = vpop.xlane.xlu0 %136  ;;  %630 = vrsqrt.f32 %v461_v60 }
  0xd0   :  { %v301_v28 = vadd.f32 %v300_v55, %v299_v43  ;;  %v186_v37 = vadd.f32 %v140_v31, %v137_v32  ;;  %v944_v0 = vadd.f32 %v297_v46, %v296_v39  ;;  %v183_v1 = vadd.f32 %v182_v52, %v181_v23 }
  0xd1   :  { %632 = vrsqrt.f32 %v477_v63 }
  0xd2   :  { %v302_v53 = vrot.slane %v301_v28, 2  ;;  %v187_v61 = vrot.slane %v186_v37, 4  ;;  %v478_v9 = vmax.f32 %v944_v0, 1e-24  ;;  %v184_v11 = vrot.slane %v183_v1, 1 }
  0xd3   :  { %v260_v44 = vpop.xlane.xlu1 %259  ;;  %v257_v45 = vpop.xlane.xlu0 %256 }
  0xd4   :  { %v306_v62 = vadd.f32 %v260_v44, %v257_v45  ;;  %v303_v2 = vadd.f32 %v302_v53, %v301_v28  ;;  %v188_v5 = vadd.f32 %v187_v61, %v186_v37  ;;  %634 = vrsqrt.f32 %v478_v9 }
  0xd5   :  { %v947_v21 = vadd.f32 %v184_v11, %v183_v1 }
  0xd6   :  { %v307_v7 = vrot.slane %v306_v62, 4  ;;  %v304_v13 = vrot.slane %v303_v2, 1  ;;  %v189_v17 = vrot.slane %v188_v5, 2 }
  0xd7   :  { %v146_v56 = vpop.xlane.xlu1 %145  ;;  %v143_v57 = vpop.xlane.xlu0 %142  ;;  %v463_v44 = vmax.f32 %v947_v21, 1e-24 }
  0xd8   :  { %v193_v10 = vadd.f32 %v146_v56, %v143_v57  ;;  %v308_v18 = vadd.f32 %v307_v7, %v306_v62  ;;  %v949_v25 = vadd.f32 %v304_v13, %v303_v2  ;;  %v951_v31 = vpop.eup %628  ;;  %v190_v32 = vadd.f32 %v189_v17, %v188_v5 }
  0xd9   :  { %v631_v43 = vpop.eup %630  ;;  %v494_v49 = vmul.f32 %v951_v31, %v951_v31  ;;  %636 = vrsqrt.f32 %v463_v44 }
  0xda   :  { %v194_v20 = vrot.slane %v193_v10, 4  ;;  %v309_v33 = vrot.slane %v308_v18, 2  ;;  %v479_v56 = vmax.f32 %v949_v25, 1e-24  ;;  %v191_v57 = vrot.slane %v190_v32, 1 }
  0xdb   :  { %v266_v29 = vpop.xlane.xlu1 %265  ;;  %v263_v40 = vpop.xlane.xlu0 %262  ;;  %v502_v47 = vmul.f32 %v494_v49, %v935_v22 }
  0xdc   :  { %v313_v12 = vadd.f32 %v266_v29, %v263_v40  ;;  %v195_v38 = vadd.f32 %v194_v20, %v193_v10  ;;  %v633_v48 = vpop.eup %632  ;;  %v310_v6 = vadd.f32 %v309_v33, %v308_v18  ;;  %v493_v29 = vmul.f32 %v631_v43, %v631_v43 }
  0xdd   :  { %v509_v40 = vmul.f32 %v633_v48, %v633_v48  ;;  %638 = vrsqrt.f32 %v479_v56  ;;  %v958_v60 = vadd.f32 %v191_v57, %v190_v32  ;;  %v962_v13 = vmul.f32 %v633_v48, %v631_v43 }
  0xde   :  { %v314_v24 = vrot.slane %v313_v12, 4  ;;  %v196_v39 = vrot.slane %v195_v38, 2  ;;  %v635_v46 = vpop.eup %634  ;;  %v311_v61 = vrot.slane %v310_v6, 1 }
  0xdf   :  { %v152_v58 = vpop.xlane.xlu1 %151  ;;  %v149_v59 = vpop.xlane.xlu0 %148  ;;  %v517_v5 = vmul.f32 %v509_v40, %v939_v41  ;;  %v510_v7 = vmul.f32 %v635_v46, %v635_v46 }
  0xe0   :  { %v200_v14 = vadd.f32 %v152_v58, %v149_v59  ;;  %v315_v45 = vadd.f32 %v314_v24, %v313_v12  ;;  %v197_v63 = vadd.f32 %v196_v39, %v195_v38  ;;  %v971_v38 = vmul.f32 %v635_v46, %v951_v31 }
  0xe2   :  { %v201_v26 = vrot.slane %v200_v14, 4  ;;  %v316_v37 = vrot.slane %v315_v45, 2 }
  0xe3   :  { %v272_v3 = vpop.xlane.xlu1 %271  ;;  %v269_v4 = vpop.xlane.xlu0 %268 }
  0xe4   :  { %v320_v19 = vadd.f32 %v272_v3, %v269_v4  ;;  %v202_v50 = vadd.f32 %v201_v26, %v200_v14  ;;  %v501_v4 = vmul.f32 %v493_v29, %v937_v36  ;;  %v317_v9 = vadd.f32 %v316_v37, %v315_v45  ;;  %v973_v43 = vpop.eup %636 }
  0xe5   :  { %v518_v26 = vmul.f32 %v510_v7, %v944_v0 }
  0xe6   :  { %v321_v34 = vrot.slane %v320_v19, 4  ;;  %v203_v52 = vrot.slane %v202_v50, 2  ;;  %v967_v41 = vadd.f32 %v517_v5, %v501_v4 }
  0xe7   :  { %v158_v15 = vpop.xlane.xlu1 %157  ;;  %v155_v16 = vpop.xlane.xlu0 %154 }
  0xe8   :  { %v207_v42 = vadd.f32 %v158_v15, %v155_v16  ;;  %v322_v8 = vadd.f32 %v321_v34, %v320_v19  ;;  %v204_v22 = vadd.f32 %v203_v52, %v202_v50  ;;  %v464_v15 = vmax.f32 %v958_v60, 1e-24 }
  0xe9   :  { %v965_v16 = vadd.f32 %v311_v61, %v310_v6  ;;  %v198_v19 = vrot.slane %v197_v63, 1  ;;  %v986_v6 = vmul.f32 %v973_v43, %v973_v43 }
  0xea   :  { %v208_v23 = vrot.slane %v207_v42, 4  ;;  %v323_v62 = vrot.slane %v322_v8, 2  ;;  %v205_v32 = vrot.slane %v204_v22, 1  ;;  %640 = vrsqrt.f32 %v464_v15 }
  0xeb   :  { %v278_v27 = vpop.xlane.xlu1 %277  ;;  %v275_v30 = vpop.xlane.xlu0 %274  ;;  %v480_v44 = vmax.f32 %v965_v16, 1e-24  ;;  %v976_v50 = vadd.f32 %v198_v19, %v197_v63 }
  0xec   :  { %v327_v35 = vadd.f32 %v278_v27, %v275_v30  ;;  %v209_v1 = vadd.f32 %v208_v23, %v207_v42  ;;  %v324_v17 = vadd.f32 %v323_v62, %v322_v8  ;;  %v318_v27 = vrot.slane %v317_v9, 1 }
  0xed   :  { %v988_v8 = vadd.f32 %v205_v32, %v204_v22  ;;  %642 = vrsqrt.f32 %v480_v44 }
  0xee   :  { %v328_v51 = vrot.slane %v327_v35, 4  ;;  %v210_v20 = vrot.slane %v209_v1, 2  ;;  %v325_v45 = vrot.slane %v324_v17, 1  ;;  %v982_v56 = vadd.f32 %v318_v27, %v317_v9 }
  0xef   :  { %v164_v54 = vpop.xlane.xlu1 %163  ;;  %v161_v55 = vpop.xlane.xlu0 %160 }
  0xf0   :  { %v214_v28 = vadd.f32 %v164_v54, %v161_v55  ;;  %v329_v53 = vadd.f32 %v328_v51, %v327_v35  ;;  %v211_v0 = vadd.f32 %v210_v20, %v209_v1  ;;  %v978_v54 = vpop.eup %638  ;;  %v980_v55 = vadd.f32 %v518_v26, %v502_v47 }
  0xf1   :  { %v990_v40 = vadd.f32 %v325_v45, %v324_v17  ;;  %v465_v47 = vmax.f32 %v976_v50, 1e-24  ;;  %v481_v61 = vmax.f32 %v982_v56, 1e-24  ;;  %v466_v1 = vmax.f32 %v988_v8, 1e-24 }
  0xf2   :  { %v215_v2 = vrot.slane %v214_v28, 4  ;;  %v330_v10 = vrot.slane %v329_v53, 2  ;;  %v212_v52 = vrot.slane %v211_v0, 1 }
  0xf3   :  { %v284_v58 = vpop.xlane.xlu1 %283  ;;  %v281_v59 = vpop.xlane.xlu0 %280  ;;  %v482_v9 = vmax.f32 %v990_v40, 1e-24  ;;  %644 = vrsqrt.f32 %v465_v47 }
  0xf4   :  { %v334_v3 = vadd.f32 %v284_v58, %v281_v59  ;;  %v216_v36 = vadd.f32 %v215_v2, %v214_v28  ;;  %v331_v33 = vadd.f32 %v330_v10, %v329_v53  ;;  %v511_v59 = vmul.f32 %v978_v54, %v978_v54  ;;  %v1002_v20 = vpop.eup %640 }
  0xf5   :  { %646 = vrsqrt.f32 %v481_v61 }
  0xf6   :  { %v335_v11 = vrot.slane %v334_v3, 4  ;;  %v217_v51 = vrot.slane %v216_v36, 2  ;;  %v332_v39 = vrot.slane %v331_v33, 1  ;;  %648 = vrsqrt.f32 %v466_v1 }
  0xf7   :  { %v362_v12 = vpop.xlane.xlu1 %361  ;;  %v359_v14 = vpop.xlane.xlu0 %358  ;;  %650 = vrsqrt.f32 %v482_v9 }
  0xf8   :  { %v405_v18 = vadd.f32 %v362_v12, %v359_v14  ;;  %v336_v24 = vadd.f32 %v335_v11, %v334_v3  ;;  %v218_v53 = vadd.f32 %v217_v51, %v216_v36  ;;  %v997_v2 = vadd.f32 %v332_v39, %v331_v33 }
  0xf9   :  { %v1000_v12 = vadd.f32 %v212_v52, %v211_v0 }
  0xfa   :  { %v406_v30 = vrot.slane %v405_v18, 4  ;;  %v337_v34 = vrot.slane %v336_v24, 2  ;;  %v219_v14 = vrot.slane %v218_v53, 1  ;;  %v483_v36 = vmax.f32 %v997_v2, 1e-24 }
  0xfb   :  { %v368_v35 = vpop.xlane.xlu1 %367  ;;  %v365_v42 = vpop.xlane.xlu0 %364 }
  0xfc   :  { %v407_v48 = vadd.f32 %v406_v30, %v405_v18  ;;  %v412_v49 = vadd.f32 %v368_v35, %v365_v42  ;;  %v338_v23 = vadd.f32 %v337_v34, %v336_v24  ;;  %v467_v35 = vmax.f32 %v1000_v12, 1e-24 }
  0xfd   :  { %v1008_v42 = vadd.f32 %v219_v14, %v218_v53  ;;  %652 = vrsqrt.f32 %v483_v36 }
  0xfe   :  { %v408_v31 = vrot.slane %v407_v48, 2  ;;  %v413_v57 = vrot.slane %v412_v49, 4  ;;  %v339_v3 = vrot.slane %v338_v23, 1  ;;  %654 = vrsqrt.f32 %v467_v35 }
  0xff   :  { %v374_v28 = vpop.xlane.xlu1 %373  ;;  %v371_v29 = vpop.xlane.xlu0 %370 }
 0x100   :  { %v409_v37 = vadd.f32 %v408_v31, %v407_v48  ;;  %v414_v46 = vadd.f32 %v413_v57, %v412_v49  ;;  %v419_v58 = vadd.f32 %v374_v28, %v371_v29  ;;  %v1005_v24 = vadd.f32 %v339_v3, %v338_v23  ;;  %v643_v48 = vpop.eup %642 }
 0x101   :  { %v519_v49 = vmul.f32 %v511_v59, %v949_v25  ;;  %v496_v57 = vmul.f32 %v1002_v20, %v1002_v20  ;;  %v468_v25 = vmax.f32 %v1008_v42, 1e-24  ;;  %v512_v1 = vmul.f32 %v643_v48, %v643_v48 }
 0x102   :  { %v410_v62 = vrot.slane %v409_v37, 1  ;;  %v415_v63 = vrot.slane %v414_v46, 2  ;;  %v420_v4 = vrot.slane %v419_v58, 4  ;;  %v484_v39 = vmax.f32 %v1005_v24, 1e-24 }
 0x103   :  { %v380_v5 = vpop.xlane.xlu1 %379  ;;  %v377_v7 = vpop.xlane.xlu0 %376  ;;  %v520_v36 = vmul.f32 %v512_v1, %v965_v16 }
 0x104   :  { %v411_v22 = vadd.f32 %v410_v62, %v409_v37  ;;  %v416_v10 = vadd.f32 %v415_v63, %v414_v46  ;;  %v426_v11 = vadd.f32 %v380_v5, %v377_v7  ;;  %v421_v15 = vadd.f32 %v420_v4, %v419_v58  ;;  %v645_v63 = vpop.eup %644 }
 0x105   :  { %656 = vrsqrt.f32 %v484_v39  ;;  %v503_v5 = vmul.f32 %v986_v6, %v947_v21  ;;  %v497_v21 = vmul.f32 %v645_v63, %v645_v63 }
 0x106   :  { %v533_v17 = vmul.f32 2.0, %v411_v22  ;;  %v417_v18 = vrot.slane %v416_v10, 1  ;;  %v427_v19 = vrot.slane %v426_v11, 4  ;;  %v422_v26 = vrot.slane %v421_v15, 2 }
 0x107   :  { %v386_v27 = vpop.xlane.xlu1 %385  ;;  %v383_v30 = vpop.xlane.xlu0 %382  ;;  %658 = vrsqrt.f32 %v468_v25  ;;  %v505_v39 = vmul.f32 %v497_v21, %v976_v50 }
 0x108   :  { %v418_v32 = vadd.f32 %v417_v18, %v416_v10  ;;  %v428_v33 = vadd.f32 %v427_v19, %v426_v11  ;;  %v433_v34 = vadd.f32 %v386_v27, %v383_v30  ;;  %v549_v44 = vmul.f32 %v962_v13, %v533_v17 }
 0x109   :  { %v423_v45 = vadd.f32 %v422_v26, %v421_v15  ;;  %v527_v15 = vadd.f32 %v519_v49, %v503_v5  ;;  %v504_v17 = vmul.f32 %v496_v57, %v958_v60 }
 0x10a   :  { %v534_v0 = vmul.f32 2.0, %v418_v32  ;;  %v429_v51 = vrot.slane %v428_v33, 2  ;;  %v434_v31 = vrot.slane %v433_v34, 4  ;;  %v557_v52 = vsub.f32 %v967_v41, %v549_v44 }
 0x10b   :  { %v424_v23 = vrot.slane %v423_v45, 1  ;;  %v392_v28 = vpop.xlane.xlu1 %391  ;;  %v389_v29 = vpop.xlane.xlu0 %388  ;;  %v544_v44 = vmul.f32 %v643_v48, %v1002_v20  ;;  %v528_v57 = vadd.f32 %v520_v36, %v504_v17 }
 0x10c   :  { %v550_v37 = vmul.f32 %v971_v38, %v534_v0  ;;  %v430_v46 = vadd.f32 %v429_v51, %v428_v33  ;;  %v435_v13 = vadd.f32 %v434_v31, %v433_v34  ;;  %v440_v47 = vadd.f32 %v392_v28, %v389_v29  ;;  %v647_v38 = vpop.eup %646 }
 0x10d   :  { %v425_v53 = vadd.f32 %v424_v23, %v423_v45  ;;  %v649_v41 = vpop.eup %648  ;;  %v513_v32 = vmul.f32 %v647_v38, %v647_v38 }
 0x10e   :  { %v558_v58 = vsub.f32 %v980_v55, %v550_v37  ;;  %v431_v59 = vrot.slane %v430_v46, 1  ;;  %v436_v61 = vrot.slane %v435_v13, 2  ;;  %v441_v62 = vrot.slane %v440_v47, 4  ;;  %v651_v14 = vpop.eup %650 }
 0x10f   :  { %v398_v3 = vpop.xlane.xlu1 %397  ;;  %v395_v4 = vpop.xlane.xlu0 %394  ;;  %v543_v55 = vmul.f32 %v978_v54, %v973_v43  ;;  %v535_v18 = vmul.f32 2.0, %v425_v53  ;;  %v514_v54 = vmul.f32 %v651_v14, %v651_v14  ;;  %v498_v60 = vmul.f32 %v649_v41, %v649_v41 }
 0x110   :  { %v1021_v7 = vadd.f32 %v558_v58, %v557_v52  ;;  %v432_v9 = vadd.f32 %v431_v59, %v430_v46  ;;  %v437_v22 = vadd.f32 %v436_v61, %v435_v13  ;;  %v442_v10 = vadd.f32 %v441_v62, %v440_v47  ;;  %v653_v43 = vpop.eup %652 }
 0x111   :  { %v447_v11 = vadd.f32 %v398_v3, %v395_v4  ;;  %v551_v0 = vmul.f32 %v543_v55, %v535_v18  ;;  %v655_v16 = vpop.eup %654  ;;  %v521_v29 = vmul.f32 %v513_v32, %v982_v56  ;;  %v545_v46 = vmul.f32 %v647_v38, %v645_v63 }
 0x112   :  { %v438_v19 = vrot.slane %v437_v22, 1  ;;  %v443_v6 = vrot.slane %v442_v10, 2  ;;  %v536_v33 = vmul.f32 2.0, %v432_v9  ;;  %v657_v47 = vpop.eup %656  ;;  %v522_v20 = vmul.f32 %v514_v54, %v990_v40 }
 0x113   :  { %v448_v26 = vrot.slane %v447_v11, 4  ;;  %v404_v27 = vpop.xlane.xlu1 %403  ;;  %v401_v30 = vpop.xlane.xlu0 %400  ;;  %v515_v48 = vmul.f32 %v653_v43, %v653_v43  ;;  %v506_v53 = vmul.f32 %v498_v60, %v988_v8  ;;  %v559_v58 = vsub.f32 %v527_v15, %v551_v0 }
 0x114   :  { %v439_v34 = vadd.f32 %v438_v19, %v437_v22  ;;  %v454_v35 = vadd.f32 %v404_v27, %v401_v30  ;;  %v444_v45 = vadd.f32 %v443_v6, %v442_v10  ;;  %v552_v37 = vmul.f32 %v544_v44, %v536_v33  ;;  %v659_v62 = vpop.eup %658 }
 0x115   :  { %v449_v49 = vadd.f32 %v448_v26, %v447_v11  ;;  %v499_v50 = vmul.f32 %v655_v16, %v655_v16  ;;  %v546_v1 = vmul.f32 %v651_v14, %v649_v41  ;;  %v529_v56 = vadd.f32 %v521_v29, %v505_v39 }
 0x116   :  { %v537_v51 = vmul.f32 2.0, %v439_v34  ;;  %v455_v31 = vrot.slane %v454_v35, 4  ;;  %v445_v23 = vrot.slane %v444_v45, 1  ;;  %v516_v5 = vmul.f32 %v657_v47, %v657_v47 }
 0x117   :  { %v450_v28 = vrot.slane %v449_v49, 2  ;;  %v560_v63 = vsub.f32 %v528_v57, %v552_v37  ;;  %v530_v9 = vadd.f32 %v522_v20, %v506_v53  ;;  %v523_v40 = vmul.f32 %v515_v48, %v997_v2 }
 0x118   :  { %v456_v13 = vadd.f32 %v455_v31, %v454_v35  ;;  %v446_v25 = vadd.f32 %v445_v23, %v444_v45  ;;  %v553_v59 = vmul.f32 %v545_v46, %v537_v51  ;;  %v500_v10 = vmul.f32 %v659_v62, %v659_v62 }
 0x119   :  { %v451_v52 = vadd.f32 %v450_v28, %v449_v49  ;;  %v593_v8 = vadd.f32 %v1021_v7, %v559_v58  ;;  %v507_v17 = vmul.f32 %v499_v50, %v1000_v12  ;;  %v547_v18 = vmul.f32 %v655_v16, %v653_v43  ;;  %v591_v43 = vld [vmem:[#allocation7] sm:$0x1] }
 0x11a   :  { %v457_v61 = vrot.slane %v456_v13, 2  ;;  %v538_v3 = vmul.f32 2.0, %v446_v25  ;;  %v561_v11 = vsub.f32 %v529_v56, %v553_v59  ;;  %v524_v14 = vmul.f32 %v516_v5, %v1005_v24 }
 0x11b   :  { %v452_v4 = vrot.slane %v451_v52, 1  ;;  %v594_v19 = vadd.f32 %v593_v8, %v560_v63  ;;  %v531_v6 = vadd.f32 %v523_v40, %v507_v17  ;;  %v508_v2 = vmul.f32 %v500_v10, %v1008_v42 }
 0x11c   :  { %v458_v38 = vadd.f32 %v457_v61, %v456_v13  ;;  %v554_v22 = vmul.f32 %v546_v1, %v538_v3  ;;  %v548_v30 = vmul.f32 %v659_v62, %v657_v47 }
 0x11d   :  { %v453_v55 = vadd.f32 %v452_v4, %v451_v52  ;;  %v595_v27 = vadd.f32 %v594_v19, %v561_v11  ;;  %v532_v7 = vadd.f32 %v524_v14, %v508_v2 }
 0x11e   :  { %v459_v15 = vrot.slane %v458_v38, 1  ;;  %v562_v36 = vsub.f32 %v530_v9, %v554_v22 }
 0x11f   :  { %v539_v41 = vmul.f32 2.0, %v453_v55 }
 0x120   :  { %v460_v21 = vadd.f32 %v459_v15, %v458_v38  ;;  %v596_v34 = vadd.f32 %v595_v27, %v562_v36 }
 0x121   :  { %v555_v26 = vmul.f32 %v547_v18, %v539_v41 }
 0x122   :  { %v540_v32 = vmul.f32 2.0, %v460_v21 }
 0x123   :  { %v563_v33 = vsub.f32 %v531_v6, %v555_v26 }
 0x124   :  { %v556_v35 = vmul.f32 %v548_v30, %v540_v32 }
 0x125   :  { %v597_v12 = vadd.f32 %v596_v34, %v563_v33 }
 0x126   :  { %v564_v54 = vsub.f32 %v532_v7, %v556_v35 }
 0x128   :  { %v598_v24 = vadd.f32 %v597_v12, %v564_v54 }
 0x12a   :  { %v599_v44 = vadd.f32 %v598_v24, %v591_v43 }
 0x12c   :  { %601 = vst.msk [vmem:[#allocation7] sm:$0x1] %vm66_vm1, %v599_v44 }
 0x12d   :  { %715 = shalt.err (!%p712_p6)
}
 0x12e   :  { %s716_s11 = scalar_lea.hbm %s1052_s2, 16 }
 0x12f   :  { %p717_p7 = scmp.ne.s32.totalorder %s1052_s2, %s716_s11  ;;  %p720_p8 = scmp.lt.u32.totalorder %s716_s11, %s1052_s2 }
 0x131   :  { %p722_p9 = pnand %p720_p8, %p717_p7 }
 0x133   :  { %725 = shalt.err (!%p722_p9)
}
 0x134   :  { %611 = dma.vmem_to_hbm [thread:$0]  %s609_s6, 16, %s1052_s2, [#allocation4]  }
 0x135   :  { %730 = dma.done.wait [#allocation4], 16  }
 0x136   :  { %731 = vsyncadd [#allocation4], 4294967280 }
 0x137   :  { %615 = vsyncpa [#allocation3], 1 }
 0x138   :  { %616 = vsyncpa [#allocation6], 1 }
 0x139   :  { %617 = vsyncpa [#allocation4], 1 }

</bundles_post_ra>
